<compile_context>
chip_gen: v7x
topology: tpu7x:2x2x1
jax: 0.10.0
libtpu: 0.0.40
codegen_flags: <defaults>
</compile_context>

<pallas_src>
from functools import partial

import jax
import jax.numpy as jnp
from jax import lax
from jax.experimental import pallas as pl
from jax.experimental.pallas import tpu as pltpu


_NSLOTS = 8            # row buffers for the manual HBM-gather path
_MAX_BLOCK_ROWS = 512  # rows gathered per grid step (amortizes ~0.35 us/step)
_VMEM_FRACTION = 0.72  # ~46 MiB budget on v7x (64 MiB), ~92 MiB on v5e/v6e (128 MiB)


def _round_up(x: int, m: int) -> int:
    return (x + m - 1) // m * m


def _physical_vmem_bytes() -> int:
    try:
        info = pltpu.get_tpu_info()
        v = getattr(info, "vmem_capacity_bytes", None)
        if v:
            return int(v)
    except Exception:
        pass
    return 64 * 1024 * 1024  # conservative default (v7x-sized)


# --------------------------------------------------------------------------
# Path 1: embedding table resident in VMEM (table fits the VMEM budget).
# --------------------------------------------------------------------------
def _resident_gather_kernel(idx_smem, table_ref, out_ref, *, block_rows):
    # idx_smem : SMEM (padded_batch,) int32   (scalar prefetch)
    # table_ref: VMEM (num_items, hidden)     (resident: index_map == (0, 0))
    # out_ref  : VMEM (block_rows, hidden)
    base = pl.program_id(0) * block_rows

    def body(r, carry):
        row = idx_smem[base + r]
        out_ref[pl.ds(r, 1), :] = table_ref[pl.ds(row, 1), :]
        return carry

    lax.fori_loop(0, block_rows, body, 0, unroll=8)


# --------------------------------------------------------------------------
# Path 2: table stays in HBM; manual row-DMA gather with NSLOTS-1 in flight.
# --------------------------------------------------------------------------
def _hbm_gather_kernel(idx_smem, table_hbm, out_ref, rowbuf, sems, *,
                       block_rows, nslots):
    # idx_smem : SMEM (padded_batch,) int32
    # table_hbm: HBM  (num_items, hidden)   (memory_space=pl.ANY)
    # out_ref  : VMEM (block_rows, hidden)
    # rowbuf   : VMEM (nslots, hidden) scratch
    # sems     : DMA semaphores (nslots,)
    base = pl.program_id(0) * block_rows
    inflight = nslots - 1  # rewriting a slot always happens a later iteration
                           # than its last read -> no WAR hazard inside a step.

    def _issue(r):
        slot = r % nslots
        pltpu.make_async_copy(table_hbm.at[idx_smem[base + r]],
                              rowbuf.at[slot], sems.at[slot]).start()

    # Prime the pipeline.
    def _prime(r, carry):
        _issue(r)
        return carry

    lax.fori_loop(0, min(inflight, block_rows), _prime, 0)

    def body(r, carry):
        slot = r % nslots
        pltpu.make_async_copy(table_hbm.at[0], rowbuf.at[slot],
                              sems.at[slot]).wait()
        out_ref[pl.ds(r, 1), :] = rowbuf[pl.ds(slot, 1), :]

        @pl.when(r + inflight < block_rows)
        def _():
            _issue(r + inflight)

        return carry

    lax.fori_loop(0, block_rows, body, 0)


# --------------------------------------------------------------------------
# Wrapper: plan tiling, pick path, call pallas_call.
# --------------------------------------------------------------------------
@partial(jax.jit, static_argnames=("block_rows", "force_path"))
def feature_extractor_forward(o_idxs: jax.Array, emb_table: jax.Array, *,
                              block_rows=None, force_path=None) -> jax.Array:
    """Gather emb_table[o_idxs] with a Pallas TPU kernel.

    o_idxs:    integer array, any shape
    emb_table: (num_items, hidden)
    returns:   (*o_idxs.shape, hidden), dtype of emb_table
    """
    orig_shape = o_idxs.shape
    flat = o_idxs.reshape(-1).astype(jnp.int32)
    batch = flat.shape[0]
    num_items, hidden = emb_table.shape

    # Defensive clamp: avoids data-dependent OOB DMAs / reads.
    flat = jnp.clip(flat, 0, num_items - 1)

    itemsize = jnp.dtype(emb_table.dtype).itemsize
    sublane = 8 * max(1, 4 // max(1, itemsize))  # 8 f32, 16 bf16, 32 int8/fp8

    padded = _round_up(max(batch, 1), sublane)
    if block_rows is None:
        tb = min(_MAX_BLOCK_ROWS, padded)
    else:
        tb = min(_round_up(int(block_rows), sublane), padded)
    padded = _round_up(padded, tb)
    if padded != batch:
        flat = jnp.pad(flat, (0, padded - batch))
    grid = (padded // tb,)

    # Path selection: resident table if it (double-buffered) fits VMEM budget.
    table_bytes = num_items * hidden * itemsize
    out_block_bytes = tb * hidden * itemsize
    vmem = _physical_vmem_bytes()
    budget = int(vmem * _VMEM_FRACTION)
    resident_need = 2 * table_bytes + 2 * out_block_bytes + (1 << 20)
    if force_path is None:
        path = "resident" if resident_need <= budget else "hbm"
    else:
        path = force_path

    out_bytes = padded * hidden * itemsize
    read_bytes = table_bytes if path == "resident" else out_bytes
    cost = pl.CostEstimate(flops=0, transcendentals=0,
                           bytes_accessed=int(out_bytes + read_bytes + padded * 4))

    if path == "resident":
        kernel = partial(_resident_gather_kernel, block_rows=tb)
        grid_spec = pltpu.PrefetchScalarGridSpec(
            num_scalar_prefetch=1,
            grid=grid,
            in_specs=[
                # Whole table, constant block index -> DMA'd once, resident.
                pl.BlockSpec((num_items, hidden), lambda i, idx: (0, 0)),
            ],
            out_specs=pl.BlockSpec((tb, hidden), lambda i, idx: (i, 0)),
        )
        vmem_limit = int(min(max(resident_need + (8 << 20), 32 << 20), vmem))
        params = pltpu.CompilerParams(
            dimension_semantics=("parallel",),
            vmem_limit_bytes=vmem_limit,
        )
    else:  # "hbm": manual multi-slot row-DMA gather
        kernel = partial(_hbm_gather_kernel, block_rows=tb, nslots=_NSLOTS)
        grid_spec = pltpu.PrefetchScalarGridSpec(
            num_scalar_prefetch=1,
            grid=grid,
            in_specs=[pl.BlockSpec(memory_space=pl.ANY)],  # table stays in HBM
            out_specs=pl.BlockSpec((tb, hidden), lambda i, idx: (i, 0)),
            scratch_shapes=[
                pltpu.VMEM((_NSLOTS, hidden), emb_table.dtype),
                pltpu.SemaphoreType.DMA((_NSLOTS,)),
            ],
        )
        params = pltpu.CompilerParams(dimension_semantics=("parallel",))

    out = pl.pallas_call(
        kernel,
        out_shape=jax.ShapeDtypeStruct((padded, hidden), emb_table.dtype),
        grid_spec=grid_spec,
        compiler_params=params,
        cost_estimate=cost,
    )(flat, emb_table)

    return out[:batch].reshape(orig_shape + (hidden,))


class FeatureExtractor:
    """JAX/Pallas port of the PyTorch FeatureExtractor interface."""

    def __init__(self, num_items: int = 64, hidden: int = 128,
                 dtype=jnp.float32):
        # dtype=jnp.bfloat16 halves HBM traffic / VMEM footprint for the table.
        self.cumulative_loss = 0.0
        self.name = "FeatureExtractor"
        self.num_items = num_items
        self.hidden = hidden
        self.dtype = dtype
        self.embedding = None
        self.init_parameters()

    def init_parameters(self):
        key = jax.random.PRNGKey(0)
        emb = jax.random.normal(key, (self.num_items, self.hidden), jnp.float32)
        self.embedding = (emb * 0.02).astype(self.dtype)

    def get_and_reset_loss(self) -> float:
        loss = self.cumulative_loss
        self.cumulative_loss = 0.0
        return loss

    def forward(self, o_idxs: jax.Array, *, block_rows=None,
                force_path=None) -> jax.Array:
        return feature_extractor_forward(jnp.asarray(o_idxs), self.embedding,
                                         block_rows=block_rows,
                                         force_path=force_path)

    __call__ = forward


if __name__ == "__main__":
    key = jax.random.PRNGKey(0)
    batch, num_items, hidden = 8, 64, 128

    fe = FeatureExtractor(num_items=num_items, hidden=hidden)
    o_idxs = jax.random.randint(key, (batch,), 0, num_items, dtype=jnp.int32)
    ref = fe.embedding[o_idxs]

    # 1) Default path (table resident in VMEM).
    out = jax.block_until_ready(fe(o_idxs))
    assert out.shape == (batch, hidden), out.shape
    assert jnp.allclose(out, ref), "resident-path gather mismatch"

    # 2) Forced manual HBM-gather path (large-table fallback).
    out_hbm = jax.block_until_ready(fe(o_idxs, force_path="hbm"))
    assert jnp.allclose(out_hbm, ref), "hbm-path gather mismatch"

    # 3) Multi-block grid with padding (batch not a multiple of the block).
    key2 = jax.random.PRNGKey(1)
    o_idxs2 = jax.random.randint(key2, (20,), 0, num_items, dtype=jnp.int32)
    out2 = jax.block_until_ready(fe(o_idxs2, block_rows=8))
    assert out2.shape == (20, hidden), out2.shape
    assert jnp.allclose(out2, fe.embedding[o_idxs2]), "multi-block gather mismatch"

    assert fe.get_and_reset_loss() == 0.0
    print("KERNEL_OK")
</pallas_src>

<mosaic_0001>
module attributes {stable_mosaic.version = 11 : i64} {
  func.func @_resident_gather_kernel(%arg0: i32, %arg1: memref<8xi32, #tpu.memory_space<smem>>, %arg2: memref<64x128xf32, #tpu.memory_space<vmem>>, %arg3: memref<8x128xf32, #tpu.memory_space<vmem>>) attributes {dimension_semantics = [#tpu.dimension_semantics<parallel>], iteration_bounds = array<i64: 1>, scalar_prefetch = 1 : i64, scratch_operands = 0 : i64, tpu.core_type = #tpu.core_type<tc>, window_params = [{pipeline_mode = #tpu.pipeline_mode<synchronous>, transform_indices = @transform_0, window_bounds = array<i64: 64, 128>}, {transform_indices = @transform_1, window_bounds = array<i64: 8, 128>}]} {
    %c8_i32 = arith.constant 8 : i32
    %0 = arith.muli %arg0, %c8_i32 : i32
    %c0_i32 = arith.constant 0 : i32
    %1 = arith.addi %0, %c0_i32 : i32
    %2 = arith.index_cast %1 : i32 to index
    %3 = memref.load %arg1[%2] : memref<8xi32, #tpu.memory_space<smem>>
    %4 = arith.index_cast %3 : i32 to index
    %c0 = arith.constant 0 : index
    %5 = vector.load %arg2[%4, %c0] : memref<64x128xf32, #tpu.memory_space<vmem>>, vector<1x128xf32>
    %6 = arith.index_cast %c0_i32 : i32 to index
    %c0_0 = arith.constant 0 : index
    %7 = vector.load %arg3[%6, %c0_0] : memref<8x128xf32, #tpu.memory_space<vmem>>, vector<1x128xf32>
    tpu.vector_store %arg3[%6, %c0_0], %5 {strides = array<i32>} : memref<8x128xf32, #tpu.memory_space<vmem>>, vector<1x128xf32>,
    %c1_i32 = arith.constant 1 : i32
    %8 = arith.addi %0, %c1_i32 : i32
    %9 = arith.index_cast %8 : i32 to index
    %10 = memref.load %arg1[%9] : memref<8xi32, #tpu.memory_space<smem>>
    %11 = arith.index_cast %10 : i32 to index
    %c0_1 = arith.constant 0 : index
    %12 = vector.load %arg2[%11, %c0_1] : memref<64x128xf32, #tpu.memory_space<vmem>>, vector<1x128xf32>
    %13 = arith.index_cast %c1_i32 : i32 to index
    %c0_2 = arith.constant 0 : index
    %14 = vector.load %arg3[%13, %c0_2] : memref<8x128xf32, #tpu.memory_space<vmem>>, vector<1x128xf32>
    tpu.vector_store %arg3[%13, %c0_2], %12 {strides = array<i32>} : memref<8x128xf32, #tpu.memory_space<vmem>>, vector<1x128xf32>,
    %c2_i32 = arith.constant 2 : i32
    %15 = arith.addi %0, %c2_i32 : i32
    %16 = arith.index_cast %15 : i32 to index
    %17 = memref.load %arg1[%16] : memref<8xi32, #tpu.memory_space<smem>>
    %18 = arith.index_cast %17 : i32 to index
    %c0_3 = arith.constant 0 : index
    %19 = vector.load %arg2[%18, %c0_3] : memref<64x128xf32, #tpu.memory_space<vmem>>, vector<1x128xf32>
    %20 = arith.index_cast %c2_i32 : i32 to index
    %c0_4 = arith.constant 0 : index
    %21 = vector.load %arg3[%20, %c0_4] : memref<8x128xf32, #tpu.memory_space<vmem>>, vector<1x128xf32>
    tpu.vector_store %arg3[%20, %c0_4], %19 {strides = array<i32>} : memref<8x128xf32, #tpu.memory_space<vmem>>, vector<1x128xf32>,
    %c3_i32 = arith.constant 3 : i32
    %22 = arith.addi %0, %c3_i32 : i32
    %23 = arith.index_cast %22 : i32 to index
    %24 = memref.load %arg1[%23] : memref<8xi32, #tpu.memory_space<smem>>
    %25 = arith.index_cast %24 : i32 to index
    %c0_5 = arith.constant 0 : index
    %26 = vector.load %arg2[%25, %c0_5] : memref<64x128xf32, #tpu.memory_space<vmem>>, vector<1x128xf32>
    %27 = arith.index_cast %c3_i32 : i32 to index
    %c0_6 = arith.constant 0 : index
    %28 = vector.load %arg3[%27, %c0_6] : memref<8x128xf32, #tpu.memory_space<vmem>>, vector<1x128xf32>
    tpu.vector_store %arg3[%27, %c0_6], %26 {strides = array<i32>} : memref<8x128xf32, #tpu.memory_space<vmem>>, vector<1x128xf32>,
    %c4_i32 = arith.constant 4 : i32
    %29 = arith.addi %0, %c4_i32 : i32
    %30 = arith.index_cast %29 : i32 to index
    %31 = memref.load %arg1[%30] : memref<8xi32, #tpu.memory_space<smem>>
    %32 = arith.index_cast %31 : i32 to index
    %c0_7 = arith.constant 0 : index
    %33 = vector.load %arg2[%32, %c0_7] : memref<64x128xf32, #tpu.memory_space<vmem>>, vector<1x128xf32>
    %34 = arith.index_cast %c4_i32 : i32 to index
    %c0_8 = arith.constant 0 : index
    %35 = vector.load %arg3[%34, %c0_8] : memref<8x128xf32, #tpu.memory_space<vmem>>, vector<1x128xf32>
    tpu.vector_store %arg3[%34, %c0_8], %33 {strides = array<i32>} : memref<8x128xf32, #tpu.memory_space<vmem>>, vector<1x128xf32>,
    %c5_i32 = arith.constant 5 : i32
    %36 = arith.addi %0, %c5_i32 : i32
    %37 = arith.index_cast %36 : i32 to index
    %38 = memref.load %arg1[%37] : memref<8xi32, #tpu.memory_space<smem>>
    %39 = arith.index_cast %38 : i32 to index
    %c0_9 = arith.constant 0 : index
    %40 = vector.load %arg2[%39, %c0_9] : memref<64x128xf32, #tpu.memory_space<vmem>>, vector<1x128xf32>
    %41 = arith.index_cast %c5_i32 : i32 to index
    %c0_10 = arith.constant 0 : index
    %42 = vector.load %arg3[%41, %c0_10] : memref<8x128xf32, #tpu.memory_space<vmem>>, vector<1x128xf32>
    tpu.vector_store %arg3[%41, %c0_10], %40 {strides = array<i32>} : memref<8x128xf32, #tpu.memory_space<vmem>>, vector<1x128xf32>,
    %c6_i32 = arith.constant 6 : i32
    %43 = arith.addi %0, %c6_i32 : i32
    %44 = arith.index_cast %43 : i32 to index
    %45 = memref.load %arg1[%44] : memref<8xi32, #tpu.memory_space<smem>>
    %46 = arith.index_cast %45 : i32 to index
    %c0_11 = arith.constant 0 : index
    %47 = vector.load %arg2[%46, %c0_11] : memref<64x128xf32, #tpu.memory_space<vmem>>, vector<1x128xf32>
    %48 = arith.index_cast %c6_i32 : i32 to index
    %c0_12 = arith.constant 0 : index
    %49 = vector.load %arg3[%48, %c0_12] : memref<8x128xf32, #tpu.memory_space<vmem>>, vector<1x128xf32>
    tpu.vector_store %arg3[%48, %c0_12], %47 {strides = array<i32>} : memref<8x128xf32, #tpu.memory_space<vmem>>, vector<1x128xf32>,
    %c7_i32 = arith.constant 7 : i32
    %50 = arith.addi %0, %c7_i32 : i32
    %51 = arith.index_cast %50 : i32 to index
    %52 = memref.load %arg1[%51] : memref<8xi32, #tpu.memory_space<smem>>
    %53 = arith.index_cast %52 : i32 to index
    %c0_13 = arith.constant 0 : index
    %54 = vector.load %arg2[%53, %c0_13] : memref<64x128xf32, #tpu.memory_space<vmem>>, vector<1x128xf32>
    %55 = arith.index_cast %c7_i32 : i32 to index
    %c0_14 = arith.constant 0 : index
    %56 = vector.load %arg3[%55, %c0_14] : memref<8x128xf32, #tpu.memory_space<vmem>>, vector<1x128xf32>
    tpu.vector_store %arg3[%55, %c0_14], %54 {strides = array<i32>} : memref<8x128xf32, #tpu.memory_space<vmem>>, vector<1x128xf32>,
    %c8_i32_15 = arith.constant 8 : i32
    return
  }
  func.func @transform_0(%arg0: i32, %arg1: memref<8xi32, #tpu.memory_space<smem>>) -> (i32, i32) {
    %c0_i32 = arith.constant 0 : i32
    %c0_i32_0 = arith.constant 0 : i32
    %c0_i32_1 = arith.constant 0 : i32
    return %c0_i32, %c0_i32_0 : i32, i32
  }
  func.func @transform_1(%arg0: i32, %arg1: memref<8xi32, #tpu.memory_space<smem>>) -> (i32, i32) {
    %c0_i32 = arith.constant 0 : i32
    %c0_i32_0 = arith.constant 0 : i32
    return %arg0, %c0_i32 : i32, i32
  }
}

</mosaic_0001>

<bundles_post_ra>
// kernel: feature_extractor_forward.1
= control target key start
LH: loop header
LB: loop body
LE: loop exit
PB: predicated region body
PF: predicated region fallthrough
CT: control target
= control target key end

     0   :  { %s221_s0 = inlined_call_operand.vmem [shape: s32[8], index: 0, kind: input, shape index: {}]   ;;  %s222_s1 = inlined_call_operand.hbm [shape: f32[64,128], index: 1, kind: input, shape index: {}]   ;;  %s223_s2 = inlined_call_operand.hbm [shape: f32[8,128], index: 2, kind: output, shape index: {}]  }
   0x1   :  { %s7_s11 = sshll.u32 %s221_s0, 4  ;;  %s8_s11 = int_to_ptr.vmem [resolvable:$true] %s7_s11 }
   0x2   :  { %s105_s12 = scalar_lea.vmem %s8_s11, 16  ;;  %p110_p1 = scmp.lt.s32.totalorder %s8_s11, %s8_s11 }
   0x3   :  { %p106_p0 = scmp.ne.s32.totalorder %s8_s11, %s105_s12  ;;  %p111_p2 = scmp.lt.s32.totalorder %s105_s12, %s105_s12 }
   0x5   :  { %p112_p3 = por %p111_p2, %p110_p1 }
   0x7   :  { %p113_p4 = pnand %p112_p3, %p106_p0 }
   0x9   :  { %116 = shalt.err (!%p113_p4)  }
   0xa   :  { %s167_s13 = smov [#allocation3]  }
   0xb   :  { %10 = dma.vmem_to_smem %s8_s11, 16, %s167_s13, [#allocation2] }
   0xc   :  { %161 = dma.done.wait [#allocation2], 16 }
   0xd   :  { %162 = vsyncadd [#allocation2], 4294967280 }
   0xe   :  { %12 = sfence }
   0xf   :  { %13 = vsyncpa [#allocation5], 0 }
  0x10   :  { %14 = vsyncpa [#allocation6], 0  ;;  %s168_s14 = smov [#allocation4]   ;;  %s117_s17 = scalar_lea.hbm %s222_s1, 1024 }
  0x11   :  { %s20_s15 = sshll.u32 %s168_s14, 4  ;;  %p118_p5 = scmp.ne.s32.totalorder %s222_s1, %s117_s17  ;;  %s21_s15 = int_to_ptr.vmem [resolvable:$true] %s20_s15 }
  0x12   :  { %p121_p6 = scmp.lt.u32.totalorder %s117_s17, %s222_s1 }
  0x14   :  { %p123_p7 = pnand %p121_p6, %p118_p5 }
  0x16   :  { %126 = shalt.err (!%p123_p7)
}
  0x17   :  { %s127_s22 = scalar_lea.vmem %s21_s15, 1024  ;;  %p132_p9 = scmp.lt.s32.totalorder %s21_s15, %s21_s15 }
  0x18   :  { %p128_p8 = scmp.ne.s32.totalorder %s21_s15, %s127_s22  ;;  %p133_p10 = scmp.lt.s32.totalorder %s127_s22, %s127_s22 }
  0x1a   :  { %p134_p11 = por %p133_p10, %p132_p9 }
  0x1c   :  { %p135_p12 = pnand %p134_p11, %p128_p8 }
  0x1e   :  { %138 = shalt.err (!%p135_p12)
}
  0x1f   :  { %s169_s23 = smov 128   ;;  %s170_s24 = smov 8  }
  0x20   :  { %26 = dma.hbm_to_vmem [thread:$0]  %s222_s1, 1024, %s21_s15, [#allocation5], %s169_s23, %s169_s23, %s170_s24  }
  0x21   :  { %163 = dma.done.wait [#allocation5], 1024  }
  0x22   :  { %164 = vsyncadd [#allocation5], 4294966272  ;;  %s31_s27 = sld [smem:[#allocation3]]  ;;  %s93_s28 = sld [smem:[#allocation3 + $0x1]] }
  0x23   :  { %s94_s29 = sld [smem:[#allocation3 + $0x2]]  ;;  %s95_s30 = sld [smem:[#allocation3 + $0x3]] }
  0x24   :  { %s96_s3 = sld [smem:[#allocation3 + $0x4]]  ;;  %s97_s4 = sld [smem:[#allocation3 + $0x5]] }
  0x25   :  { %s98_s5 = sld [smem:[#allocation3 + $0x6]]  ;;  %s99_s6 = sld [smem:[#allocation3 + $0x7]] }
  0x26   :  { %s171_s7 = smov [#allocation7]  }
  0x27   :  { %s76_s8 = sshll.u32 %s171_s7, 4  ;;  %s202_s8 = int_to_ptr.vmem [resolvable:$true] %s76_s8 }
  0x28   :  { %s32_s9 = scalar_lea.vmem [#allocation4], %s31_s27  ;;  %s37_s10 = scalar_lea.vmem [#allocation4], %s93_s28 }
  0x29   :  { %v33_v0 = vld [vmem:[%s32_s9] sm:$0x1]  ;;  %s42_s1 = scalar_lea.vmem [#allocation4], %s94_s29  ;;  %s47_s11 = scalar_lea.vmem [#allocation4], %s95_s30 }
  0x2a   :  { %v38_v1 = vld [vmem:[%s37_s10] sm:$0x1]  ;;  %34 = vst [vmem:[#allocation7] sm:$0x1] %v33_v0  ;;  %s52_s12 = scalar_lea.vmem [#allocation4], %s96_s3  ;;  %s57_s13 = scalar_lea.vmem [#allocation4], %s97_s4 }
  0x2b   :  { %39 = vst [vmem:[#allocation7 + $0x1] sm:$0x1] %v38_v1  ;;  %v43_v2 = vld [vmem:[%s42_s1] sm:$0x1]  ;;  %s62_s14 = scalar_lea.vmem [#allocation4], %s98_s5  ;;  %s67_s15 = scalar_lea.vmem [#allocation4], %s99_s6 }
  0x2c   :  { %v48_v3 = vld [vmem:[%s47_s11] sm:$0x1]  ;;  %44 = vst [vmem:[#allocation7 + $0x2] sm:$0x1] %v43_v2  ;;  %s139_s16 = scalar_lea.vmem %s202_s8, 128  ;;  %p144_p0 = scmp.lt.s32.totalorder %s202_s8, %s202_s8 }
  0x2d   :  { %49 = vst [vmem:[#allocation7 + $0x3] sm:$0x1] %v48_v3  ;;  %v53_v4 = vld [vmem:[%s52_s12] sm:$0x1]  ;;  %p140_p13 = scmp.ne.s32.totalorder %s202_s8, %s139_s16  ;;  %p145_p1 = scmp.lt.s32.totalorder %s139_s16, %s139_s16 }
  0x2e   :  { %v58_v5 = vld [vmem:[%s57_s13] sm:$0x1]  ;;  %54 = vst [vmem:[#allocation7 + $0x4] sm:$0x1] %v53_v4 }
  0x2f   :  { %59 = vst [vmem:[#allocation7 + $0x5] sm:$0x1] %v58_v5  ;;  %v63_v6 = vld [vmem:[%s62_s14] sm:$0x1]  ;;  %p146_p2 = por %p145_p1, %p144_p0 }
  0x30   :  { %v68_v7 = vld [vmem:[%s67_s15] sm:$0x1]  ;;  %64 = vst [vmem:[#allocation7 + $0x6] sm:$0x1] %v63_v6 }
  0x31   :  { %69 = vst [vmem:[#allocation7 + $0x7] sm:$0x1] %v68_v7  ;;  %p147_p3 = pnand %p146_p2, %p140_p13 }
  0x33   :  { %150 = shalt.err (!%p147_p3)
}
  0x34   :  { %s151_s18 = scalar_lea.hbm %s223_s2, 128 }
  0x35   :  { %p152_p4 = scmp.ne.s32.totalorder %s223_s2, %s151_s18  ;;  %p155_p5 = scmp.lt.u32.totalorder %s151_s18, %s223_s2 }
  0x37   :  { %p157_p6 = pnand %p155_p5, %p152_p4 }
  0x39   :  { %160 = shalt.err (!%p157_p6)
}
  0x3a   :  { %79 = dma.vmem_to_hbm [thread:$0]  %s202_s8, 128, %s223_s2, [#allocation6]  }
  0x3b   :  { %165 = dma.done.wait [#allocation6], 128  }
  0x3c   :  { %166 = vsyncadd [#allocation6], 4294967168 }
  0x3d   :  { %83 = vsyncpa [#allocation5], 1 }
  0x3e   :  { %84 = vsyncpa [#allocation6], 1 }

</bundles_post_ra>
